<compile_context>
chip_gen: v7x
topology: tpu7x:2x2x1
jax: 0.10.0
libtpu: 0.0.40
codegen_flags: <defaults>
</compile_context>

<pallas_src>
import functools

import jax
import jax.numpy as jnp
from jax import lax
from jax.experimental import pallas as pl
from jax.experimental.pallas import tpu as pltpu


# ---------------------------------------------------------------------------
# Pallas kernel: fused cross-entropy partial-sum reduction
# ---------------------------------------------------------------------------
def _gvi_ce_kernel(logits_ref, labels_ref, out_ref, *,
                   n_valid, tiles_per_core, tile_rows):
    c = pl.program_id(0)   # core-split axis ("parallel")
    i = pl.program_id(1)   # batch-tile reduction axis ("arbitrary")

    # Output block (1,128) is resident across the reduction axis -> accumulator.
    @pl.when(i == 0)
    def _init():
        out_ref[...] = jnp.zeros_like(out_ref)

    logits = logits_ref[...].astype(jnp.float32)      # (TB, C), upcast in-kernel
    labels = labels_ref[...]                          # (TB, 1) int32

    # numerically stable per-row logsumexp
    row_max = jnp.max(logits, axis=-1, keepdims=True)
    lse = jnp.log(jnp.sum(jnp.exp(logits - row_max), axis=-1, keepdims=True)) + row_max

    # logits[row, label[row]] via one-hot compare (no gather on TPU)
    cls = lax.broadcasted_iota(jnp.int32, logits.shape, 1)
    picked = jnp.sum(jnp.where(cls == labels, logits, 0.0), axis=-1, keepdims=True)

    nll = lse - picked                                # (TB, 1)

    # Logical (unclamped) tile position; tiles that overrun the batch (the tail tile
    # and any duplicated clamped tile on core 1) must mask invalid rows.
    start_row = (c * tiles_per_core + i) * tile_rows
    needs_mask = start_row + tile_rows > n_valid

    @pl.when(needs_mask)
    def _tail():
        rows = start_row + lax.broadcasted_iota(jnp.int32, nll.shape, 0)
        out_ref[...] += jnp.sum(jnp.where(rows < n_valid, nll, 0.0))

    @pl.when(jnp.logical_not(needs_mask))
    def _interior():
        out_ref[...] += jnp.sum(nll)


# ---------------------------------------------------------------------------
# Wrapper (== GaussianVariationalInference.forward)
# ---------------------------------------------------------------------------
def _gaussian_vi_loss(logits, y, kl, beta, *, max_tile_rows=None):
    B, C = logits.shape
    itemsize = jnp.dtype(logits.dtype).itemsize
    sub = 8 * max(1, 4 // itemsize)            # packed sublane tile: f32=8, bf16=16, i8=32

    # Row tile sized against an ~8 MiB logits-tile budget (double buffered by Pallas).
    budget = 8 * 1024 * 1024
    rows = max(sub, (budget // max(1, C * itemsize)) // sub * sub)
    if max_tile_rows is not None:
        rows = max(sub, min(rows, (max_tile_rows // sub) * sub))
    tb = B if rows >= B else rows              # full-extent block is always legal

    tiles = pl.cdiv(B, tb)                     # batch tiles (last one may be partial)
    n_cores = min(2, tiles)                    # split reduction across v7x's 2 TCs
    tiles_per_core = pl.cdiv(tiles, n_cores)

    labels = y.reshape(B, 1).astype(jnp.int32)

    tile_bytes = tb * C * itemsize
    vmem_limit = int(min(max(2 * tile_bytes + 2 * tb * 4 + (4 << 20), 16 << 20),
                         60 << 20))            # stay under v7x's 64 MiB physical VMEM

    def row_tile_map(c, i):
        # Clamp so the (possibly duplicated) final tile on core 1 never DMAs OOB;
        # its rows are fully masked in-kernel via the unclamped start_row.
        return (jnp.minimum(c * tiles_per_core + i, tiles - 1), 0)

    out = pl.pallas_call(
        functools.partial(_gvi_ce_kernel, n_valid=B,
                          tiles_per_core=tiles_per_core, tile_rows=tb),
        out_shape=jax.ShapeDtypeStruct((1, n_cores * 128), jnp.float32),
        grid_spec=pltpu.PrefetchScalarGridSpec(
            num_scalar_prefetch=0,
            grid=(n_cores, tiles_per_core),
            in_specs=[
                pl.BlockSpec((tb, C), row_tile_map),   # logits, native dtype, no pad
                pl.BlockSpec((tb, 1), row_tile_map),   # labels
            ],
            out_specs=pl.BlockSpec((1, 128), lambda c, i: (0, c)),  # per-core partial
        ),
        compiler_params=pltpu.CompilerParams(
            dimension_semantics=("parallel", "arbitrary"),
            vmem_limit_bytes=vmem_limit),
        cost_estimate=pl.CostEstimate(
            flops=6 * B * C + 8 * B,
            transcendentals=B * C + B,
            bytes_accessed=B * C * itemsize + B * 4 + n_cores * 512),
    )(logits, labels)

    # Each core's 128-lane block holds its partial CE sum broadcast across lanes.
    ce_mean = jnp.sum(out[0, ::128]) / B
    return ce_mean + jnp.asarray(beta, jnp.float32) * jnp.asarray(kl, jnp.float32)


gaussian_vi_loss = jax.jit(_gaussian_vi_loss, static_argnames=("max_tile_rows",))


def _reference(logits, y, kl, beta):
    lp = jax.nn.log_softmax(logits.astype(jnp.float32), axis=-1)
    ce = -jnp.mean(jnp.take_along_axis(lp, y[:, None].astype(jnp.int32), axis=-1))
    return ce + jnp.asarray(beta, jnp.float32) * jnp.asarray(kl, jnp.float32)


# ---------------------------------------------------------------------------
if __name__ == "__main__":
    key = jax.random.PRNGKey(0)
    k_logits, k_labels, k_kl = jax.random.split(key, 3)

    kl = jnp.sum(jax.random.normal(k_kl, (64,), jnp.float32) ** 2)  # stand-in KL scalar
    beta = jnp.float32(0.1)

    # Case 1: small classifier head, f32, single tile / single core
    B, C = 16, 10
    logits = jax.random.normal(k_logits, (B, C), jnp.float32)
    y = jax.random.randint(k_labels, (B,), 0, C, dtype=jnp.int32)
    loss = gaussian_vi_loss(logits, y, kl, beta)
    jax.block_until_ready(loss)
    ref = _reference(logits, y, kl, beta)
    assert loss.shape == (), loss.shape
    assert jnp.allclose(loss, ref, rtol=1e-5, atol=1e-5), (float(loss), float(ref))

    # Case 2: multi-tile reduction + 2-way core split + partial/duplicate tile masking
    B2, C2 = 40, 10
    logits2 = jax.random.normal(k_logits, (B2, C2), jnp.float32)
    y2 = jax.random.randint(k_labels, (B2,), 0, C2, dtype=jnp.int32)
    loss2 = gaussian_vi_loss(logits2, y2, kl, beta, max_tile_rows=16)
    jax.block_until_ready(loss2)
    ref2 = _reference(logits2, y2, kl, beta)
    assert jnp.allclose(loss2, ref2, rtol=1e-5, atol=1e-5), (float(loss2), float(ref2))

    # Case 3: native bf16 logits (upcast in-kernel), non-multiple-of-128 class count
    B3, C3 = 24, 17
    logits3 = jax.random.normal(k_logits, (B3, C3), jnp.float32).astype(jnp.bfloat16)
    y3 = jax.random.randint(k_labels, (B3,), 0, C3, dtype=jnp.int32)
    loss3 = gaussian_vi_loss(logits3, y3, kl, beta)
    jax.block_until_ready(loss3)
    ref3 = _reference(logits3, y3, kl, beta)
    assert jnp.allclose(loss3, ref3, rtol=1e-4, atol=1e-4), (float(loss3), float(ref3))

    print("KERNEL_OK")
</pallas_src>

<mosaic_0001>
module attributes {stable_mosaic.version = 11 : i64} {
  func.func @_gvi_ce_kernel(%arg0: i32, %arg1: i32, %arg2: memref<16x10xf32, #tpu.memory_space<vmem>>, %arg3: memref<16x1xi32, #tpu.memory_space<vmem>>, %arg4: memref<1x128xf32, #tpu.memory_space<vmem>>) attributes {dimension_semantics = [#tpu.dimension_semantics<parallel>, #tpu.dimension_semantics<arbitrary>], iteration_bounds = array<i64: 1, 1>, scalar_prefetch = 0 : i64, scratch_operands = 0 : i64, tpu.core_type = #tpu.core_type<tc>, window_params = [{transform_indices = @transform_0, window_bounds = array<i64: 16, 10>}, {transform_indices = @transform_1, window_bounds = array<i64: 16, 1>}, {transform_indices = @transform_2, window_bounds = array<i64: 1, 128>}]} {
    %c0_i32 = arith.constant 0 : i32
    %0 = arith.cmpi eq, %arg1, %c0_i32 : i32
    %1 = arith.extui %0 : i1 to i32
    %c0_i32_0 = arith.constant 0 : i32
    %2 = arith.cmpi ne, %1, %c0_i32_0 : i32
    scf.if %2 {
      %cst_11 = arith.constant 0.000000e+00 : f32
      %32 = vector.broadcast %cst_11 : f32 to vector<1x128xf32>
      %c0_12 = arith.constant 0 : index
      %c0_13 = arith.constant 0 : index
      %33 = vector.load %arg4[%c0_12, %c0_13] : memref<1x128xf32, #tpu.memory_space<vmem>>, vector<1x128xf32>
      tpu.vector_store %arg4[%c0_12, %c0_13], %32 {strides = array<i32>} : memref<1x128xf32, #tpu.memory_space<vmem>>, vector<1x128xf32>,
    } else {
    }
    %c0 = arith.constant 0 : index
    %c0_1 = arith.constant 0 : index
    %3 = vector.load %arg2[%c0, %c0_1] : memref<16x10xf32, #tpu.memory_space<vmem>>, vector<16x10xf32>
    %c0_2 = arith.constant 0 : index
    %c0_3 = arith.constant 0 : index
    %4 = vector.load %arg3[%c0_2, %c0_3] : memref<16x1xi32, #tpu.memory_space<vmem>>, vector<16x1xi32>
    %cst = arith.constant dense<0xFF800000> : vector<16xf32>
    %5 = vector.multi_reduction <maximumf>, %3, %cst [1] : vector<16x10xf32> to vector<16xf32>
    %6 = vector.shape_cast %5 : vector<16xf32> to vector<16x1xf32>
    %7 = vector.broadcast %6 : vector<16x1xf32> to vector<16x10xf32>
    %8 = arith.subf %3, %7 : vector<16x10xf32>
    %9 = math.exp %8 : vector<16x10xf32>
    %cst_4 = arith.constant dense<0.000000e+00> : vector<16xf32>
    %10 = vector.multi_reduction <add>, %9, %cst_4 [1] : vector<16x10xf32> to vector<16xf32>
    %11 = vector.shape_cast %10 : vector<16xf32> to vector<16x1xf32>
    %12 = math.log %11 : vector<16x1xf32>
    %13 = arith.addf %12, %6 : vector<16x1xf32>
    %14 = tpu.iota {dimensions = array<i32: 1>} : vector<16x10xi32>
    %15 = vector.broadcast %4 : vector<16x1xi32> to vector<16x10xi32>
    %16 = arith.cmpi eq, %14, %15 : vector<16x10xi32>
    %cst_5 = arith.constant 0.000000e+00 : f32
    %17 = vector.broadcast %cst_5 : f32 to vector<16x10xf32>
    %18 = arith.select %16, %3, %17 : vector<16x10xi1>, vector<16x10xf32>
    %cst_6 = arith.constant dense<0.000000e+00> : vector<16xf32>
    %19 = vector.multi_reduction <add>, %18, %cst_6 [1] : vector<16x10xf32> to vector<16xf32>
    %20 = vector.shape_cast %19 : vector<16xf32> to vector<16x1xf32>
    %21 = arith.subf %13, %20 : vector<16x1xf32>
    %c1_i32 = arith.constant 1 : i32
    %22 = arith.muli %arg0, %c1_i32 : i32
    %23 = arith.addi %22, %arg1 : i32
    %c16_i32 = arith.constant 16 : i32
    %24 = arith.muli %23, %c16_i32 : i32
    %c16_i32_7 = arith.constant 16 : i32
    %25 = arith.addi %24, %c16_i32_7 : i32
    %c16_i32_8 = arith.constant 16 : i32
    %26 = arith.cmpi sgt, %25, %c16_i32_8 : i32
    %27 = arith.extui %26 : i1 to i32
    %c0_i32_9 = arith.constant 0 : i32
    %28 = arith.cmpi ne, %27, %c0_i32_9 : i32
    scf.if %28 {
      %32 = tpu.iota {dimensions = array<i32: 0>} : vector<16x1xi32>
      %33 = vector.broadcast %24 : i32 to vector<16x1xi32>
      %34 = arith.addi %33, %32 : vector<16x1xi32>
      %c0_11 = arith.constant 0 : index
      %c0_12 = arith.constant 0 : index
      %35 = vector.load %arg4[%c0_11, %c0_12] : memref<1x128xf32, #tpu.memory_space<vmem>>, vector<1x128xf32>
      %c16_i32_13 = arith.constant 16 : i32
      %36 = vector.broadcast %c16_i32_13 : i32 to vector<16x1xi32>
      %37 = arith.cmpi slt, %34, %36 : vector<16x1xi32>
      %cst_14 = arith.constant 0.000000e+00 : f32
      %38 = vector.broadcast %cst_14 : f32 to vector<16x1xf32>
      %39 = arith.select %37, %21, %38 : vector<16x1xi1>, vector<16x1xf32>
      %40 = vector.shape_cast %39 : vector<16x1xf32> to vector<1x16x1xf32>
      %cst_15 = arith.constant dense<0.000000e+00> : vector<1xf32>
      %41 = vector.multi_reduction <add>, %40, %cst_15 [1, 2] : vector<1x16x1xf32> to vector<1xf32>
      %42 = vector.shape_cast %41 : vector<1xf32> to vector<1x1x1xf32>
      %43 = vector.extract %42[0, 0, 0] : f32 from vector<1x1x1xf32>
      %44 = vector.broadcast %43 : f32 to vector<1x128xf32>
      %45 = arith.addf %35, %44 : vector<1x128xf32>
      %c0_16 = arith.constant 0 : index
      %c0_17 = arith.constant 0 : index
      %46 = vector.load %arg4[%c0_16, %c0_17] : memref<1x128xf32, #tpu.memory_space<vmem>>, vector<1x128xf32>
      tpu.vector_store %arg4[%c0_16, %c0_17], %45 {strides = array<i32>} : memref<1x128xf32, #tpu.memory_space<vmem>>, vector<1x128xf32>,
    } else {
    }
    %true = arith.constant true
    %29 = arith.xori %26, %true : i1
    %30 = arith.extui %29 : i1 to i32
    %c0_i32_10 = arith.constant 0 : i32
    %31 = arith.cmpi ne, %30, %c0_i32_10 : i32
    scf.if %31 {
      %c0_11 = arith.constant 0 : index
      %c0_12 = arith.constant 0 : index
      %32 = vector.load %arg4[%c0_11, %c0_12] : memref<1x128xf32, #tpu.memory_space<vmem>>, vector<1x128xf32>
      %33 = vector.shape_cast %21 : vector<16x1xf32> to vector<1x16x1xf32>
      %cst_13 = arith.constant dense<0.000000e+00> : vector<1xf32>
      %34 = vector.multi_reduction <add>, %33, %cst_13 [1, 2] : vector<1x16x1xf32> to vector<1xf32>
      %35 = vector.shape_cast %34 : vector<1xf32> to vector<1x1x1xf32>
      %36 = vector.extract %35[0, 0, 0] : f32 from vector<1x1x1xf32>
      %37 = vector.broadcast %36 : f32 to vector<1x128xf32>
      %38 = arith.addf %32, %37 : vector<1x128xf32>
      %c0_14 = arith.constant 0 : index
      %c0_15 = arith.constant 0 : index
      %39 = vector.load %arg4[%c0_14, %c0_15] : memref<1x128xf32, #tpu.memory_space<vmem>>, vector<1x128xf32>
      tpu.vector_store %arg4[%c0_14, %c0_15], %38 {strides = array<i32>} : memref<1x128xf32, #tpu.memory_space<vmem>>, vector<1x128xf32>,
    } else {
    }
    return
  }
  func.func @transform_0(%arg0: i32, %arg1: i32) -> (i32, i32) {
    %c1_i32 = arith.constant 1 : i32
    %0 = arith.muli %arg0, %c1_i32 : i32
    %1 = arith.addi %0, %arg1 : i32
    %c0_i32 = arith.constant 0 : i32
    %2 = arith.minsi %1, %c0_i32 : i32
    %c0_i32_0 = arith.constant 0 : i32
    %c0_i32_1 = arith.constant 0 : i32
    return %2, %c0_i32_0 : i32, i32
  }
  func.func @transform_1(%arg0: i32, %arg1: i32) -> (i32, i32) {
    %c1_i32 = arith.constant 1 : i32
    %0 = arith.muli %arg0, %c1_i32 : i32
    %1 = arith.addi %0, %arg1 : i32
    %c0_i32 = arith.constant 0 : i32
    %2 = arith.minsi %1, %c0_i32 : i32
    %c0_i32_0 = arith.constant 0 : i32
    %c0_i32_1 = arith.constant 0 : i32
    return %2, %c0_i32_0 : i32, i32
  }
  func.func @transform_2(%arg0: i32, %arg1: i32) -> (i32, i32) {
    %c0_i32 = arith.constant 0 : i32
    %c0_i32_0 = arith.constant 0 : i32
    return %c0_i32, %arg0 : i32, i32
  }
}

</mosaic_0001>

<bundles_post_ra>
// kernel: _gaussian_vi_loss.1
= control target key start
LH: loop header
LB: loop body
LE: loop exit
PB: predicated region body
PF: predicated region fallthrough
CT: control target
= control target key end

     0   :  { %vm84_vm0 = vcmask 80896   ;;  %v214_v2 = vmov 0   ;;  %v109_v11 = vlaneseq  ;;  %vm168_vm3 = vcmask 7168   ;;  %s258_s0 = inlined_call_operand.vmem [shape: f32[16,10], index: 0, kind: input, shape index: {}]   ;;  %s259_s1 = inlined_call_operand.vmem [shape: s32[16,1], index: 1, kind: input, shape index: {}]   ;;  %s260_s2 = inlined_call_operand.vmem [shape: f32[1,128], index: 2, kind: output, shape index: {}]  }
   0x1   :  { %v80_v0 = vld [vmem:[%s258_s0] sm:$0xff]  ;;  %v81_v1 = vld [vmem:[%s258_s0 + $0x8] sm:$0xff]  ;;  %204 = vset.pattern.permute.xlu1 %v214_v2  ;;  %205 = vset.pattern.permute.xlu0 %v214_v2  ;;  %v215_v40 = vmov 0.0  }
   0x2   :  { %v82_v3 = vld [vmem:[%s259_s1] sm:$0xff]  ;;  %v85_v4 = vsel %vm84_vm0, %v80_v0, -inf  ;;  %v83_v5 = vld [vmem:[%s259_s1 + $0x8] sm:$0xff]  ;;  %v88_v6 = vsel %vm84_vm0, %v81_v1, -inf  ;;  %v110_v15 = vand.u32 127, %v109_v11  ;;  %79 = vst [vmem:[%s260_s2] sm:$0x1] %v215_v40 }
   0x3   :  { %112 = vperm.xlu1 %204, %v82_v3   ;;  %86 = vmax.xlane.f32.xlu0 %v85_v4 }
   0x7   :  { %115 = vperm.xlu1 %204, %v83_v5   ;;  %89 = vmax.xlane.f32.xlu0 %v88_v6 }
   0x9   :  { %v167_v48 = vld [vmem:[%s260_s2] sm:$0x1] }
  0x82   :  { %v113_v14 = vpop.permute.xlu1 %112 }
  0x83   :  { %vm117_vm1 = vcmp.eq.s32.totalorder %v110_v15, %v113_v14 }
  0x84   :  { %v119_v18 = vsel %vm117_vm1, %v80_v0, 0.0 }
  0x85   :  { %v121_v20 = vsel %vm84_vm0, %v119_v18, 0.0 }
  0x86   :  { %v116_v16 = vpop.permute.xlu1 %115 }
  0x87   :  { %vm118_vm2 = vcmp.eq.s32.totalorder %v110_v15, %v116_v16 }
  0x88   :  { %v120_v22 = vsel %vm118_vm2, %v81_v1, 0.0 }
  0x89   :  { %v124_v24 = vsel %vm84_vm0, %v120_v22, 0.0 }
  0x90   :  { %v87_v7 = vpop.xlane.xlu0 %86 }
  0x91   :  { %v91_v8 = vsub.f32 %v80_v0, %v87_v7 }
  0x93   :  { %v93_v9 = vmul.f32 1.442695, %v91_v8 }
  0x94   :  { %v90_v10 = vpop.xlane.xlu0 %89 }
  0x95   :  { %206 = vpow2.f32 %v93_v9  ;;  %v92_v12 = vsub.f32 %v81_v1, %v90_v10 }
  0x97   :  { %v95_v13 = vmul.f32 1.442695, %v92_v12 }
  0x99   :  { %208 = vpow2.f32 %v95_v13 }
  0x9f   :  { %v207_v17 = vpop.eup %206 }
  0xa0   :  { %v97_v19 = vsel %vm84_vm0, %v207_v17, 0.0 }
  0xa1   :  { %98 = vadd.xlane.f32.xlu0 %v97_v19 }
  0xa3   :  { %v209_v21 = vpop.eup %208 }
  0xa4   :  { %v100_v23 = vsel %vm84_vm0, %v209_v21, 0.0 }
  0xa5   :  { %101 = vadd.xlane.f32.xlu1 %v100_v23  ;;  %122 = vadd.xlane.f32.xlu0 %v121_v20 }
  0xa9   :  { %125 = vadd.xlane.f32.xlu0 %v124_v24 }
 0x12e   :  { %v99_v25 = vpop.xlane.xlu0 %98 }
 0x12f   :  { %210 = vlog2.f32 %v99_v25 }
 0x132   :  { %v102_v26 = vpop.xlane.xlu1 %101  ;;  %v123_v29 = vpop.xlane.xlu0 %122 }
 0x133   :  { %212 = vlog2.f32 %v102_v26 }
 0x136   :  { %v126_v35 = vpop.xlane.xlu0 %125 }
 0x139   :  { %v211_v27 = vpop.eup %210 }
 0x13a   :  { %v104_v28 = vmul.f32 0.6931472, %v211_v27 }
 0x13c   :  { %v107_v30 = vadd.f32 %v104_v28, %v87_v7 }
 0x13d   :  { %v213_v31 = vpop.eup %212 }
 0x13e   :  { %v106_v32 = vmul.f32 0.6931472, %v213_v31  ;;  %v127_v33 = vsub.f32 %v107_v30, %v123_v29 }
 0x140   :  { %v108_v34 = vadd.f32 %v106_v32, %v90_v10  ;;  %v169_v37 = vsel %vm168_vm3, %v127_v33, 0.0 }
 0x142   :  { %v128_v36 = vsub.f32 %v108_v34, %v126_v35 }
 0x144   :  { %v170_v38 = vsel %vm168_vm3, %v128_v36, 0.0 }
 0x145   :  { %v171_v39 = vadd.f32 %v170_v38, %v169_v37 }
 0x147   :  { %172 = vadd.xlane.f32.xlu0 %v171_v39 }
 0x1d4   :  { %v173_v41 = vpop.xlane.xlu0 %172 }
 0x1d5   :  { %v174_v42 = vrot.slane %v173_v41, 4 }
 0x1d7   :  { %v175_v43 = vadd.f32 %v174_v42, %v173_v41 }
 0x1d9   :  { %v176_v44 = vrot.slane %v175_v43, 2 }
 0x1db   :  { %v177_v45 = vadd.f32 %v176_v44, %v175_v43 }
 0x1dd   :  { %v178_v46 = vrot.slane %v177_v45, 1 }
 0x1df   :  { %v179_v47 = vadd.f32 %v178_v46, %v177_v45 }
 0x1e1   :  { %200 = vpush %v179_v47 }
 0x212   :  { %s201_s19 = spop %200 }
 0x213   :  { %v181_v49 = vstv %s201_s19 }
 0x214   :  { %v182_v50 = vadd.f32 %v181_v49, %v167_v48 }
 0x216   :  { %183 = vst [vmem:[%s260_s2] sm:$0x1] %v182_v50 }

</bundles_post_ra>
